<compile_context>
chip_gen: v6e
topology: v6e:2x2x1
jax: 0.10.0
libtpu: 0.0.40
codegen_flags: <defaults>
</compile_context>

<pallas_src>
from functools import partial

import jax
import jax.numpy as jnp
from jax.experimental import pallas as pl
from jax.experimental.pallas import tpu as pltpu


def _round_up(x: int, m: int) -> int:
    return (x + m - 1) // m * m


# ---------------------------------------------------------------------------
# Kernel: one fused MLP block per batch tile.
#   out = relu(x @ W1 + b1) @ W2 + b2
# W1 = [Wa1 | Wc1] (inputs, 512); W2 block-diagonal [[Wa2, 0], [0, Wc2]] padded
# to 128 columns, so the single output slab is [actor_logits | value | 0-pad].
# Weights may be bf16 (operands cast inside the kernel); accumulation is f32.
# ---------------------------------------------------------------------------
def _ann_v1_fused_kernel(x_ref, w1_ref, b1_ref, w2_ref, b2_ref, out_ref):
    w1 = w1_ref[...]
    x = x_ref[...].astype(w1.dtype)
    h = jnp.dot(x, w1, preferred_element_type=jnp.float32) + b1_ref[...]
    h = jnp.maximum(h, 0.0)
    w2 = w2_ref[...]
    out = jnp.dot(h.astype(w2.dtype), w2, preferred_element_type=jnp.float32)
    out = out + b2_ref[...]
    out_ref[...] = out.astype(out_ref.dtype)


# ---------------------------------------------------------------------------
# One-time parameter packing (hoisted out of the per-call hot path).
# Input params use the PyTorch nn.Linear convention: weight (out, in), bias (out,).
# ---------------------------------------------------------------------------
def pack_params(params, *, use_bf16: bool = False):
    hidden = params["actor_fc1_w"].shape[0]          # 256
    outputs = params["actor_fc2_w"].shape[0]
    n_out = outputs + 1                              # [probs | value]
    n_pad = _round_up(n_out, 128)                    # lane-dense output width
    wdt = jnp.bfloat16 if use_bf16 else jnp.float32

    # Fused fc1: (inputs, 2*hidden)
    w1 = jnp.concatenate(
        [params["actor_fc1_w"].T, params["critic_fc1_w"].T], axis=1
    ).astype(wdt)
    b1 = jnp.concatenate(
        [params["actor_fc1_b"], params["critic_fc1_b"]]
    ).reshape(1, -1).astype(jnp.float32)

    # Fused block-diagonal fc2: (2*hidden, n_pad).  Zero blocks are explicit
    # zeros so actor / critic outputs cannot cross-contaminate.
    w2 = jnp.zeros((2 * hidden, n_pad), jnp.float32)
    w2 = w2.at[:hidden, :outputs].set(params["actor_fc2_w"].T)
    w2 = w2.at[hidden:, outputs:outputs + 1].set(params["critic_fc2_w"].T)
    w2 = w2.astype(wdt)

    b2 = jnp.zeros((1, n_pad), jnp.float32)
    b2 = b2.at[0, :outputs].set(params["actor_fc2_b"])
    b2 = b2.at[0, outputs].set(params["critic_fc2_b"][0])

    return {"w1": w1, "b1": b1, "w2": w2, "b2": b2, "outputs": outputs}


# ---------------------------------------------------------------------------
# Jitted forward: batch-tiled 1-D "parallel" grid (weights VMEM-resident via
# constant index_maps), ragged last tile handled by Pallas masking (no jnp.pad),
# then slice (value, probs) out of the lane-dense output slab.
# ---------------------------------------------------------------------------
@partial(jax.jit, static_argnames=("outputs", "block_cap"))
def _ann_v1_forward_impl(x, w1, b1, w2, b2, *, outputs, block_cap=2048):
    B, inputs = x.shape
    two_hidden = w1.shape[1]
    n_pad = w2.shape[1]

    # ---- batch tile selection --------------------------------------------
    # * >= 2 grid steps whenever B > 8 so v7x's second TC can shard the batch.
    # * block_cap (default 2048) keeps per-tile VMEM well under the 32 MiB
    #   default scoped limit on all of v5e/v6e/v7x; raise it (and
    #   vmem_limit_bytes) on v5e/v6e for very large batches.
    # * No pre-padding of x: grid = cdiv(B, block_b); writes past row B in the
    #   last partial tile are dropped by Pallas.
    if B <= 8:
        block_b = B                      # single tile; block equals full dim
    else:
        n_steps = max(2, pl.cdiv(B, block_cap))
        block_b = min(_round_up(pl.cdiv(B, n_steps), 8), block_cap)
    grid = (pl.cdiv(B, block_b),)
    Bt = grid[0] * block_b               # rows actually touched (incl. masked)

    wbytes = w1.dtype.itemsize
    flops = 2 * Bt * (inputs * two_hidden + two_hidden * n_pad)
    bytes_accessed = (
        4 * (Bt * inputs + two_hidden + n_pad + Bt * n_pad)
        + wbytes * (inputs * two_hidden + two_hidden * n_pad)
    )

    out = pl.pallas_call(
        _ann_v1_fused_kernel,
        out_shape=jax.ShapeDtypeStruct((B, n_pad), jnp.float32),
        grid=grid,
        in_specs=[
            pl.BlockSpec((block_b, inputs), lambda i: (i, 0)),      # x tile
            pl.BlockSpec((inputs, two_hidden), lambda i: (0, 0)),   # fused W1
            pl.BlockSpec((1, two_hidden), lambda i: (0, 0)),        # fused b1
            pl.BlockSpec((two_hidden, n_pad), lambda i: (0, 0)),    # fused W2
            pl.BlockSpec((1, n_pad), lambda i: (0, 0)),             # fused b2
        ],
        out_specs=pl.BlockSpec((block_b, n_pad), lambda i: (i, 0)),
        compiler_params=pltpu.CompilerParams(
            dimension_semantics=("parallel",),
        ),
        cost_estimate=pl.CostEstimate(
            flops=flops, transcendentals=0, bytes_accessed=bytes_accessed
        ),
    )(x, w1, b1, w2, b2)

    probs = out[:, :outputs]
    value = out[:, outputs:outputs + 1]
    return value, probs


def ann_v1_forward(x, packed, *, block_cap: int = 2048):
    """Forward pass. `packed` comes from pack_params() (done once, off hot path)."""
    return _ann_v1_forward_impl(
        x, packed["w1"], packed["b1"], packed["w2"], packed["b2"],
        outputs=packed["outputs"], block_cap=block_cap,
    )


# ---------------------------------------------------------------------------
# Reference / synthetic params
# ---------------------------------------------------------------------------
def init_params(key, inputs, outputs, hidden=256):
    """Deterministic synthetic parameters (PyTorch Linear shape convention)."""
    ks = jax.random.split(key, 8)
    scale = 0.05
    return {
        "actor_fc1_w": scale * jax.random.normal(ks[0], (hidden, inputs), jnp.float32),
        "actor_fc1_b": scale * jax.random.normal(ks[1], (hidden,), jnp.float32),
        "actor_fc2_w": scale * jax.random.normal(ks[2], (outputs, hidden), jnp.float32),
        "actor_fc2_b": scale * jax.random.normal(ks[3], (outputs,), jnp.float32),
        "critic_fc1_w": scale * jax.random.normal(ks[4], (hidden, inputs), jnp.float32),
        "critic_fc1_b": scale * jax.random.normal(ks[5], (hidden,), jnp.float32),
        "critic_fc2_w": scale * jax.random.normal(ks[6], (1, hidden), jnp.float32),
        "critic_fc2_b": scale * jax.random.normal(ks[7], (1,), jnp.float32),
    }


def reference_forward(x, p):
    """Pure-JAX reference mirroring the PyTorch module exactly."""
    h_a = jnp.maximum(x @ p["actor_fc1_w"].T + p["actor_fc1_b"], 0.0)
    probs = h_a @ p["actor_fc2_w"].T + p["actor_fc2_b"]
    h_c = jnp.maximum(x @ p["critic_fc1_w"].T + p["critic_fc1_b"], 0.0)
    value = h_c @ p["critic_fc2_w"].T + p["critic_fc2_b"]
    return value, probs


if __name__ == "__main__":
    key = jax.random.PRNGKey(0)
    k_x, k_p = jax.random.split(key)

    B, INPUTS, OUTPUTS = 8, 32, 8
    x = jax.random.normal(k_x, (B, INPUTS), jnp.float32)
    params = init_params(k_p, INPUTS, OUTPUTS)
    v_ref, p_ref = reference_forward(x, params)

    # ---- strict f32 path (parity check) ----
    packed_f32 = pack_params(params, use_bf16=False)
    value, probs = jax.block_until_ready(ann_v1_forward(x, packed_f32))
    assert value.shape == (B, 1) and probs.shape == (B, OUTPUTS)
    assert jnp.allclose(value, v_ref, atol=1e-5, rtol=1e-5)
    assert jnp.allclose(probs, p_ref, atol=1e-5, rtol=1e-5)

    # ---- bf16-operand fast path (f32 accumulation), loose tolerance ----
    packed_bf16 = pack_params(params, use_bf16=True)
    value_b, probs_b = jax.block_until_ready(ann_v1_forward(x, packed_bf16))
    assert jnp.allclose(value_b, v_ref, atol=3e-2, rtol=3e-2)
    assert jnp.allclose(probs_b, p_ref, atol=3e-2, rtol=3e-2)

    # ---- exercise a larger, ragged, multi-tile batch (no jnp.pad copy) ----
    xb = jax.random.normal(k_x, (1000, INPUTS), jnp.float32)
    vb, pb = jax.block_until_ready(ann_v1_forward(xb, packed_f32))
    vb_ref, pb_ref = reference_forward(xb, params)
    assert vb.shape == (1000, 1) and pb.shape == (1000, OUTPUTS)
    assert jnp.allclose(vb, vb_ref, atol=1e-4, rtol=1e-4)
    assert jnp.allclose(pb, pb_ref, atol=1e-4, rtol=1e-4)

    print("KERNEL_OK")
</pallas_src>

<mosaic_0001>
module attributes {stable_mosaic.version = 11 : i64} {
  func.func @_ann_v1_fused_kernel(%arg0: i32, %arg1: memref<8x32xf32, #tpu.memory_space<vmem>>, %arg2: memref<32x512xf32, #tpu.memory_space<vmem>>, %arg3: memref<1x512xf32, #tpu.memory_space<vmem>>, %arg4: memref<512x128xf32, #tpu.memory_space<vmem>>, %arg5: memref<1x128xf32, #tpu.memory_space<vmem>>, %arg6: memref<8x128xf32, #tpu.memory_space<vmem>>) attributes {dimension_semantics = [#tpu.dimension_semantics<parallel>], iteration_bounds = array<i64: 1>, scalar_prefetch = 0 : i64, scratch_operands = 0 : i64, tpu.core_type = #tpu.core_type<tc>, window_params = [{transform_indices = @transform_0, window_bounds = array<i64: 8, 32>}, {pipeline_mode = #tpu.pipeline_mode<synchronous>, transform_indices = @transform_1, window_bounds = array<i64: 32, 512>}, {pipeline_mode = #tpu.pipeline_mode<synchronous>, transform_indices = @transform_2, window_bounds = array<i64: 1, 512>}, {pipeline_mode = #tpu.pipeline_mode<synchronous>, transform_indices = @transform_3, window_bounds = array<i64: 512, 128>}, {pipeline_mode = #tpu.pipeline_mode<synchronous>, transform_indices = @transform_4, window_bounds = array<i64: 1, 128>}, {transform_indices = @transform_5, window_bounds = array<i64: 8, 128>}]} {
    %c0 = arith.constant 0 : index
    %c0_0 = arith.constant 0 : index
    %0 = vector.load %arg2[%c0, %c0_0] : memref<32x512xf32, #tpu.memory_space<vmem>>, vector<32x512xf32>
    %c0_1 = arith.constant 0 : index
    %c0_2 = arith.constant 0 : index
    %1 = vector.load %arg1[%c0_1, %c0_2] : memref<8x32xf32, #tpu.memory_space<vmem>>, vector<8x32xf32>
    %cst = arith.constant dense<0.000000e+00> : vector<8x512xf32>
    %2 = tpu.matmul %1, %0, %cst {dimension_numbers = #tpu.dot_dimension_numbers<[1], [0], [0], [1], [0, 0, 1, 1], [], []>} : vector<8x32xf32>, vector<32x512xf32>, vector<8x512xf32> -> vector<8x512xf32>
    %c0_3 = arith.constant 0 : index
    %c0_4 = arith.constant 0 : index
    %3 = vector.load %arg3[%c0_3, %c0_4] : memref<1x512xf32, #tpu.memory_space<vmem>>, vector<1x512xf32>
    %4 = vector.broadcast %3 : vector<1x512xf32> to vector<8x512xf32>
    %5 = arith.addf %2, %4 : vector<8x512xf32>
    %cst_5 = arith.constant 0.000000e+00 : f32
    %6 = vector.broadcast %cst_5 : f32 to vector<8x512xf32>
    %7 = arith.maximumf %5, %6 : vector<8x512xf32>
    %c0_6 = arith.constant 0 : index
    %c0_7 = arith.constant 0 : index
    %8 = vector.load %arg4[%c0_6, %c0_7] : memref<512x128xf32, #tpu.memory_space<vmem>>, vector<512x128xf32>
    %cst_8 = arith.constant dense<0.000000e+00> : vector<8x128xf32>
    %9 = tpu.matmul %7, %8, %cst_8 {dimension_numbers = #tpu.dot_dimension_numbers<[1], [0], [0], [1], [0, 0, 1, 1], [], []>} : vector<8x512xf32>, vector<512x128xf32>, vector<8x128xf32> -> vector<8x128xf32>
    %c0_9 = arith.constant 0 : index
    %c0_10 = arith.constant 0 : index
    %10 = vector.load %arg5[%c0_9, %c0_10] : memref<1x128xf32, #tpu.memory_space<vmem>>, vector<1x128xf32>
    %11 = vector.broadcast %10 : vector<1x128xf32> to vector<8x128xf32>
    %12 = arith.addf %9, %11 : vector<8x128xf32>
    %c0_11 = arith.constant 0 : index
    %c0_12 = arith.constant 0 : index
    %13 = vector.load %arg6[%c0_11, %c0_12] : memref<8x128xf32, #tpu.memory_space<vmem>>, vector<8x128xf32>
    tpu.vector_store %arg6[%c0_11, %c0_12], %12 {strides = array<i32>} : memref<8x128xf32, #tpu.memory_space<vmem>>, vector<8x128xf32>,
    return
  }
  func.func @transform_0(%arg0: i32) -> (i32, i32) {
    %c0_i32 = arith.constant 0 : i32
    %c0_i32_0 = arith.constant 0 : i32
    return %arg0, %c0_i32 : i32, i32
  }
  func.func @transform_1(%arg0: i32) -> (i32, i32) {
    %c0_i32 = arith.constant 0 : i32
    %c0_i32_0 = arith.constant 0 : i32
    %c0_i32_1 = arith.constant 0 : i32
    return %c0_i32, %c0_i32_0 : i32, i32
  }
  func.func @transform_2(%arg0: i32) -> (i32, i32) {
    %c0_i32 = arith.constant 0 : i32
    %c0_i32_0 = arith.constant 0 : i32
    %c0_i32_1 = arith.constant 0 : i32
    return %c0_i32, %c0_i32_0 : i32, i32
  }
  func.func @transform_3(%arg0: i32) -> (i32, i32) {
    %c0_i32 = arith.constant 0 : i32
    %c0_i32_0 = arith.constant 0 : i32
    %c0_i32_1 = arith.constant 0 : i32
    return %c0_i32, %c0_i32_0 : i32, i32
  }
  func.func @transform_4(%arg0: i32) -> (i32, i32) {
    %c0_i32 = arith.constant 0 : i32
    %c0_i32_0 = arith.constant 0 : i32
    %c0_i32_1 = arith.constant 0 : i32
    return %c0_i32, %c0_i32_0 : i32, i32
  }
  func.func @transform_5(%arg0: i32) -> (i32, i32) {
    %c0_i32 = arith.constant 0 : i32
    %c0_i32_0 = arith.constant 0 : i32
    return %arg0, %c0_i32 : i32, i32
  }
}

</mosaic_0001>

<bundles_post_ra>
// kernel: _ann_v1_forward_impl.1
= control target key start
LH: loop header
LB: loop body
LE: loop exit
PB: predicated region body
PF: predicated region fallthrough
CT: control target
= control target key end

     0   :  { %10 = vsyncpa [#allocation3], 0  ;;  %s704_s0 = inlined_call_operand.hbm [shape: f32[8,32], index: 0, kind: input, shape index: {}]   ;;  %s705_s1 = inlined_call_operand.hbm [shape: f32[32,512], index: 1, kind: input, shape index: {}]   ;;  %s706_s2 = inlined_call_operand.hbm [shape: f32[1,512], index: 2, kind: input, shape index: {}]   ;;  %s707_s3 = inlined_call_operand.hbm [shape: f32[512,128], index: 3, kind: input, shape index: {}]   ;;  %s708_s4 = inlined_call_operand.vmem [shape: f32[1,128], index: 4, kind: input, shape index: {}]   ;;  %s709_s5 = inlined_call_operand.vmem [shape: f32[8,128], index: 5, kind: output, shape index: {}]  }
   0x1   :  { %11 = vsyncpa [#allocation5], 0 }
   0x2   :  { %12 = vsyncpa [#allocation8], 0  ;;  %s647_s18 = smov [#allocation4]  }
   0x3   :  { %s28_s19 = sshll.u32 %s647_s18, 4  ;;  %s29_s19 = int_to_ptr.vmem [resolvable:$true] %s28_s19 }
   0x4   :  { %s569_s20 = scalar_lea.vmem %s29_s19, 2048  ;;  %p574_p1 = scmp.lt.s32.totalorder %s29_s19, %s29_s19 }
   0x5   :  { %p570_p0 = scmp.ne.s32.totalorder %s29_s19, %s569_s20  ;;  %p575_p2 = scmp.lt.s32.totalorder %s569_s20, %s569_s20 }
   0x7   :  { %p576_p3 = por %p575_p2, %p574_p1 }
   0x9   :  { %p577_p4 = pnand %p576_p3, %p570_p0 }
   0xb   :  { %580 = shalt.err (!%p577_p4)
}
   0xc   :  { %s648_s21 = smov 512   ;;  %s649_s22 = smov 32  }
   0xd   :  { %34 = dma.hbm_to_vmem [thread:$0]  %s705_s1, 2048, %s29_s19, [#allocation5], %s648_s21, %s648_s21, %s649_s22  }
   0xe   :  { %s650_s25 = smov [#allocation2]   ;;  %s651_s27 = smov [#allocation6]  }
   0xf   :  { %s19_s26 = sshll.u32 %s650_s25, 4  ;;  %s41_s28 = sshll.u32 %s651_s27, 4  ;;  %s20_s26 = int_to_ptr.vmem [resolvable:$true] %s19_s26  ;;  %s42_s28 = int_to_ptr.vmem [resolvable:$true] %s41_s28 }
  0x10   :  { %s589_s29 = scalar_lea.vmem %s20_s26, 128  ;;  %p594_p6 = scmp.lt.s32.totalorder %s20_s26, %s20_s26 }
  0x11   :  { %p590_p5 = scmp.ne.s32.totalorder %s20_s26, %s589_s29  ;;  %p595_p7 = scmp.lt.s32.totalorder %s589_s29, %s589_s29 }
  0x13   :  { %p596_p8 = por %p595_p7, %p594_p6 }
  0x15   :  { %p597_p9 = pnand %p596_p8, %p590_p5 }
  0x17   :  { %600 = shalt.err (!%p597_p9)
}
  0x18   :  { %22 = dma.hbm_to_vmem [thread:$0]  %s704_s0, 128, %s20_s26, [#allocation3]  }
  0x19   :  { %s609_s7 = scalar_lea.vmem %s42_s28, 64  ;;  %p614_p11 = scmp.lt.s32.totalorder %s42_s28, %s42_s28 }
  0x1a   :  { %p610_p10 = scmp.ne.s32.totalorder %s42_s28, %s609_s7  ;;  %p615_p12 = scmp.lt.s32.totalorder %s609_s7, %s609_s7 }
  0x1c   :  { %p616_p13 = por %p615_p12, %p614_p11 }
  0x1e   :  { %p617_p0 = pnand %p616_p13, %p610_p10 }
  0x20   :  { %620 = shalt.err (!%p617_p0)
}
  0x21   :  { %44 = dma.hbm_to_vmem [thread:$0]  %s706_s2, 64, %s42_s28, [#allocation5]  }
  0x22   :  { %s652_s9 = smov [#allocation7]  }
  0x23   :  { %s50_s10 = sshll.u32 %s652_s9, 4  ;;  %s51_s10 = int_to_ptr.vmem [resolvable:$true] %s50_s10 }
  0x24   :  { %s629_s11 = scalar_lea.vmem %s51_s10, 8192  ;;  %p634_p2 = scmp.lt.s32.totalorder %s51_s10, %s51_s10 }
  0x25   :  { %p630_p1 = scmp.ne.s32.totalorder %s51_s10, %s629_s11  ;;  %p635_p3 = scmp.lt.s32.totalorder %s629_s11, %s629_s11 }
  0x27   :  { %p636_p4 = por %p635_p3, %p634_p2 }
  0x29   :  { %p637_p5 = pnand %p636_p4, %p630_p1 }
  0x2b   :  { %640 = shalt.err (!%p637_p5)
}
  0x2c   :  { %s653_s0 = smov 128   ;;  %s654_s12 = smov 8  }
  0x2d   :  { %56 = dma.hbm_to_vmem [thread:$0]  %s707_s3, 8192, %s51_s10, [#allocation8], %s653_s0, %s653_s0, %s654_s12  }
  0x2e   :  { %641 = dma.done.wait [#allocation3], 128  }
  0x2f   :  { %642 = vsyncadd [#allocation3], 4294967168 }
  0x30   :  { %643 = dma.done.wait [#allocation5], 2112  }
  0x31   :  { %644 = vsyncadd [#allocation5], 4294965184 }
  0x32   :  { %645 = dma.done.wait [#allocation8], 8192  }
  0x33   :  { %646 = vsyncadd [#allocation8], 4294959104  ;;  %v655_v0 = vmov 0.0   ;;  %v84_v1 = vld [vmem:[#allocation4 + $0x68] sm:$0xff]  ;;  %v86_v2 = vld [vmem:[#allocation4 + $0x78] sm:$0xff]  ;;  %vm110_vm0 = vcmask 261120  }
  0x34   :  { %178 = vmatprep.mubr.f32.mxu0 %v655_v0  ;;  %249 = vmatprep.mubr.f32.mxu1 %v655_v0  ;;  %v83_v3 = vld [vmem:[#allocation4 + $0x60] sm:$0xff]  ;;  %v85_v4 = vld [vmem:[#allocation4 + $0x70] sm:$0xff]  ;;  %v80_v5 = vld [vmem:[#allocation4 + $0x48] sm:$0xff] }
  0x35   :  { %138 = vmatprep.subr.mxu0 %v84_v1  ;;  %209 = vmatprep.subr.mxu1 %v86_v2  ;;  %v82_v6 = vld [vmem:[#allocation4 + $0x58] sm:$0xff]  ;;  %v79_v7 = vld [vmem:[#allocation4 + $0x40] sm:$0xff]  ;;  %v81_v8 = vld [vmem:[#allocation4 + $0x50] sm:$0xff] }
  0x36   :  { %139 = vmatpush1.msra.mxu0 %v83_v3  ;;  %210 = vmatpush1.msra.mxu1 %v85_v4  ;;  %v76_v9 = vld [vmem:[#allocation4 + $0x28] sm:$0xff]  ;;  %v78_v10 = vld [vmem:[#allocation4 + $0x38] sm:$0xff]  ;;  %v75_v11 = vld [vmem:[#allocation4 + $0x20] sm:$0xff] }
  0x37   :  { %140 = vmatprep.subr.mxu0 %v80_v5  ;;  %211 = vmatprep.subr.mxu1 %v82_v6  ;;  %v77_v12 = vld [vmem:[#allocation4 + $0x30] sm:$0xff]  ;;  %v72_v13 = vld [vmem:[#allocation4 + $0x8] sm:$0xff]  ;;  %v74_v14 = vld [vmem:[#allocation4 + $0x18] sm:$0xff] }
  0x38   :  { %141 = vmatpush1.msra.mxu0 %v79_v7  ;;  %212 = vmatpush1.msra.mxu1 %v81_v8  ;;  %v71_v15 = vld [vmem:[#allocation4] sm:$0xff]  ;;  %v73_v16 = vld [vmem:[#allocation4 + $0x10] sm:$0xff]  ;;  %v87_v17 = vld [vmem:[#allocation2] sm:$0xff] }
  0x39   :  { %142 = vmatprep.subr.mxu0 %v76_v9  ;;  %213 = vmatprep.subr.mxu1 %v78_v10  ;;  %v291_v18 = vld [vmem:[#allocation7 + $0xf8] sm:$0xff]  ;;  %v290_v22 = vld [vmem:[#allocation7 + $0xf0] sm:$0xff]  ;;  %v289_v26 = vld [vmem:[#allocation7 + $0xe8] sm:$0xff] }
  0x3a   :  { %143 = vmatpush1.msra.mxu0 %v75_v11  ;;  %214 = vmatpush1.msra.mxu1 %v77_v12  ;;  %v323_v19 = vld [vmem:[#allocation7 + $0x1f8] sm:$0xff]  ;;  %v322_v23 = vld [vmem:[#allocation7 + $0x1f0] sm:$0xff]  ;;  %v321_v27 = vld [vmem:[#allocation7 + $0x1e8] sm:$0xff] }
  0x3b   :  { %144 = vmatprep.subr.mxu0 %v72_v13  ;;  %215 = vmatprep.subr.mxu1 %v74_v14  ;;  %v275_v20 = vld [vmem:[#allocation7 + $0x78] sm:$0xff]  ;;  %v274_v24 = vld [vmem:[#allocation7 + $0x70] sm:$0xff]  ;;  %v273_v28 = vld [vmem:[#allocation7 + $0x68] sm:$0xff] }
  0x3c   :  { %145 = vmatpush1.msra.mxu0 %v71_v15  ;;  %216 = vmatpush1.msra.mxu1 %v73_v16  ;;  %v307_v21 = vld [vmem:[#allocation7 + $0x178] sm:$0xff]  ;;  %v306_v25 = vld [vmem:[#allocation7 + $0x170] sm:$0xff]  ;;  %v305_v29 = vld [vmem:[#allocation7 + $0x168] sm:$0xff] }
  0x3d   :  { %479 = vmatmul.mubr.msk.f32.vlgmr.msra.gmra.mxu0 %vm110_vm0, %v87_v17  ;;  %480 = vmatmul.mubr.msk.f32.vlgmr.msra.gmra.mxu1 %vm110_vm0, %v87_v17  ;;  %v288_v30 = vld [vmem:[#allocation7 + $0xe0] sm:$0xff]  ;;  %v287_v34 = vld [vmem:[#allocation7 + $0xd8] sm:$0xff]  ;;  %v286_v38 = vld [vmem:[#allocation7 + $0xd0] sm:$0xff] }
  0x3e   :  { %482 = vmatprep.subr.mxu0 %v291_v18  ;;  %517 = vmatprep.subr.mxu1 %v323_v19  ;;  %v320_v31 = vld [vmem:[#allocation7 + $0x1e0] sm:$0xff]  ;;  %v319_v35 = vld [vmem:[#allocation7 + $0x1d8] sm:$0xff]  ;;  %v318_v39 = vld [vmem:[#allocation7 + $0x1d0] sm:$0xff]  ;;  %v90_v18 = vlaneseq }
  0x3f   :  { %483 = vmatpush3.msra.mxu0 %v275_v20  ;;  %518 = vmatpush3.msra.mxu1 %v307_v21  ;;  %v272_v32 = vld [vmem:[#allocation7 + $0x60] sm:$0xff]  ;;  %v271_v36 = vld [vmem:[#allocation7 + $0x58] sm:$0xff]  ;;  %v270_v40 = vld [vmem:[#allocation7 + $0x50] sm:$0xff] }
  0x40   :  { %484 = vmatprep.subr.mxu0 %v290_v22  ;;  %519 = vmatprep.subr.mxu1 %v322_v23  ;;  %v304_v33 = vld [vmem:[#allocation7 + $0x160] sm:$0xff]  ;;  %v303_v37 = vld [vmem:[#allocation7 + $0x158] sm:$0xff]  ;;  %v302_v41 = vld [vmem:[#allocation7 + $0x150] sm:$0xff]  ;;  %v91_v19 = vshrl.u32 %v90_v18, 7 }
  0x41   :  { %485 = vmatpush3.msra.mxu0 %v274_v24  ;;  %520 = vmatpush3.msra.mxu1 %v306_v25  ;;  %v285_v42 = vld [vmem:[#allocation7 + $0xc8] sm:$0xff]  ;;  %v284_v46 = vld [vmem:[#allocation7 + $0xc0] sm:$0xff]  ;;  %v283_v50 = vld [vmem:[#allocation7 + $0xb8] sm:$0xff] }
  0x42   :  { %486 = vmatprep.subr.mxu0 %v289_v26  ;;  %521 = vmatprep.subr.mxu1 %v321_v27  ;;  %v317_v43 = vld [vmem:[#allocation7 + $0x1c8] sm:$0xff]  ;;  %v316_v47 = vld [vmem:[#allocation7 + $0x1c0] sm:$0xff]  ;;  %v315_v51 = vld [vmem:[#allocation7 + $0x1b8] sm:$0xff]  ;;  %v100_v20 = vsub.s32 2, %v91_v19  ;;  %v92_v21 = vsub.s32 0, %v91_v19  ;;  %v96_v23 = vsub.s32 1, %v91_v19 }
  0x43   :  { %487 = vmatpush3.msra.mxu0 %v273_v28  ;;  %522 = vmatpush3.msra.mxu1 %v305_v29  ;;  %v269_v44 = vld [vmem:[#allocation7 + $0x48] sm:$0xff]  ;;  %v268_v48 = vld [vmem:[#allocation7 + $0x40] sm:$0xff]  ;;  %v267_v52 = vld [vmem:[#allocation7 + $0x38] sm:$0xff]  ;;  %v104_v24 = vsub.s32 3, %v91_v19 }
  0x44   :  { %488 = vmatprep.subr.mxu0 %v288_v30  ;;  %523 = vmatprep.subr.mxu1 %v320_v31  ;;  %v301_v45 = vld [vmem:[#allocation7 + $0x148] sm:$0xff]  ;;  %v300_v49 = vld [vmem:[#allocation7 + $0x140] sm:$0xff]  ;;  %v299_v53 = vld [vmem:[#allocation7 + $0x138] sm:$0xff] }
  0x45   :  { %489 = vmatpush3.msra.mxu0 %v272_v32  ;;  %524 = vmatpush3.msra.mxu1 %v304_v33  ;;  %v282_v54 = vld [vmem:[#allocation7 + $0xb0] sm:$0xff]  ;;  %v281_v58 = vld [vmem:[#allocation7 + $0xa8] sm:$0xff]  ;;  %v280_v62 = vld [vmem:[#allocation7 + $0xa0] sm:$0xff] }
  0x46   :  { %490 = vmatprep.subr.mxu0 %v287_v34  ;;  %525 = vmatprep.subr.mxu1 %v319_v35  ;;  %v314_v55 = vld [vmem:[#allocation7 + $0x1b0] sm:$0xff]  ;;  %v313_v59 = vld [vmem:[#allocation7 + $0x1a8] sm:$0xff]  ;;  %v312_v63 = vld [vmem:[#allocation7 + $0x1a0] sm:$0xff] }
  0x47   :  { %491 = vmatpush3.msra.mxu0 %v271_v36  ;;  %526 = vmatpush3.msra.mxu1 %v303_v37  ;;  %v266_v56 = vld [vmem:[#allocation7 + $0x30] sm:$0xff]  ;;  %v265_v60 = vld [vmem:[#allocation7 + $0x28] sm:$0xff]  ;;  %v264_v0 = vld [vmem:[#allocation7 + $0x20] sm:$0xff] }
  0x48   :  { %492 = vmatprep.subr.mxu0 %v286_v38  ;;  %527 = vmatprep.subr.mxu1 %v318_v39  ;;  %v298_v57 = vld [vmem:[#allocation7 + $0x130] sm:$0xff]  ;;  %v297_v61 = vld [vmem:[#allocation7 + $0x128] sm:$0xff]  ;;  %v296_v1 = vld [vmem:[#allocation7 + $0x120] sm:$0xff] }
  0x49   :  { %493 = vmatpush3.msra.mxu0 %v270_v40  ;;  %528 = vmatpush3.msra.mxu1 %v302_v41  ;;  %v279_v2 = vld [vmem:[#allocation7 + $0x98] sm:$0xff]  ;;  %v278_v6 = vld [vmem:[#allocation7 + $0x90] sm:$0xff]  ;;  %v277_v10 = vld [vmem:[#allocation7 + $0x88] sm:$0xff] }
  0x4a   :  { %494 = vmatprep.subr.mxu0 %v285_v42  ;;  %529 = vmatprep.subr.mxu1 %v317_v43  ;;  %v311_v3 = vld [vmem:[#allocation7 + $0x198] sm:$0xff]  ;;  %v310_v7 = vld [vmem:[#allocation7 + $0x190] sm:$0xff]  ;;  %v309_v11 = vld [vmem:[#allocation7 + $0x188] sm:$0xff] }
  0x4b   :  { %495 = vmatpush3.msra.mxu0 %v269_v44  ;;  %530 = vmatpush3.msra.mxu1 %v301_v45  ;;  %v263_v4 = vld [vmem:[#allocation7 + $0x18] sm:$0xff]  ;;  %v262_v8 = vld [vmem:[#allocation7 + $0x10] sm:$0xff]  ;;  %v261_v12 = vld [vmem:[#allocation7 + $0x8] sm:$0xff] }
  0x4c   :  { %496 = vmatprep.subr.mxu0 %v284_v46  ;;  %531 = vmatprep.subr.mxu1 %v316_v47  ;;  %v295_v5 = vld [vmem:[#allocation7 + $0x118] sm:$0xff]  ;;  %v294_v9 = vld [vmem:[#allocation7 + $0x110] sm:$0xff]  ;;  %v293_v13 = vld [vmem:[#allocation7 + $0x108] sm:$0xff] }
  0x4d   :  { %497 = vmatpush3.msra.mxu0 %v268_v48  ;;  %532 = vmatpush3.msra.mxu1 %v300_v49  ;;  %v276_v14 = vld [vmem:[#allocation7 + $0x80] sm:$0xff]  ;;  %v88_v22 = vld [vmem:[#allocation6] sm:$0xf]  ;;  %v481_v43 = vld [vmem:[%s708_s4] ss:$0 sm:$0xff] }
  0x4e   :  { %498 = vmatprep.subr.mxu0 %v283_v50  ;;  %533 = vmatprep.subr.mxu1 %v315_v51  ;;  %v308_v15 = vld [vmem:[#allocation7 + $0x180] sm:$0xff]  ;;  %v101_v25 = vrot.slane %v88_v22, %v100_v20  ;;  %v93_v26 = vrot.slane %v88_v22, %v92_v21  ;;  %v97_v27 = vrot.slane %v88_v22, %v96_v23 }
  0x4f   :  { %499 = vmatpush3.msra.mxu0 %v267_v52  ;;  %534 = vmatpush3.msra.mxu1 %v299_v53  ;;  %v260_v16 = vld [vmem:[#allocation7] sm:$0xff]  ;;  %v105_v28 = vrot.slane %v88_v22, %v104_v24 }
  0x50   :  { %500 = vmatprep.subr.mxu0 %v282_v54  ;;  %535 = vmatprep.subr.mxu1 %v314_v55  ;;  %v292_v17 = vld [vmem:[#allocation7 + $0x100] sm:$0xff] }
  0x51   :  { %501 = vmatpush3.msra.mxu0 %v266_v56  ;;  %536 = vmatpush3.msra.mxu1 %v298_v57 }
  0x52   :  { %502 = vmatprep.subr.mxu0 %v281_v58  ;;  %537 = vmatprep.subr.mxu1 %v313_v59 }
  0x53   :  { %503 = vmatpush3.msra.mxu0 %v265_v60  ;;  %538 = vmatpush3.msra.mxu1 %v297_v61 }
  0x54   :  { %504 = vmatprep.subr.mxu0 %v280_v62  ;;  %539 = vmatprep.subr.mxu1 %v312_v63 }
  0x55   :  { %505 = vmatpush3.msra.mxu0 %v264_v0  ;;  %540 = vmatpush3.msra.mxu1 %v296_v1 }
  0x56   :  { %506 = vmatprep.subr.mxu0 %v279_v2  ;;  %541 = vmatprep.subr.mxu1 %v311_v3 }
  0x57   :  { %507 = vmatpush3.msra.mxu0 %v263_v4  ;;  %542 = vmatpush3.msra.mxu1 %v295_v5 }
  0x58   :  { %508 = vmatprep.subr.mxu0 %v278_v6  ;;  %543 = vmatprep.subr.mxu1 %v310_v7 }
  0x59   :  { %509 = vmatpush3.msra.mxu0 %v262_v8  ;;  %544 = vmatpush3.msra.mxu1 %v294_v9 }
  0x5a   :  { %510 = vmatprep.subr.mxu0 %v277_v10  ;;  %545 = vmatprep.subr.mxu1 %v309_v11 }
  0x5b   :  { %511 = vmatpush3.msra.mxu0 %v261_v12  ;;  %546 = vmatpush3.msra.mxu1 %v293_v13 }
  0x5c   :  { %512 = vmatprep.subr.mxu0 %v276_v14  ;;  %547 = vmatprep.subr.mxu1 %v308_v15 }
  0x5d   :  { %513 = vmatpush3.msra.mxu0 %v260_v16  ;;  %548 = vmatpush3.msra.mxu1 %v292_v17 }
  0xfd   :  { %v180_v29 = vpop.f32.mrf.mxu0  ;;  %v251_v30 = vpop.f32.mrf.mxu1 }
  0xfe   :  { %v252_v31 = vadd.f32 %v251_v30, %v101_v25  ;;  %v181_v32 = vadd.f32 %v180_v29, %v93_v26 }
  0xff   :  { %v182_v33 = vpop.f32.mrf.mxu0  ;;  %v253_v34 = vpop.f32.mrf.mxu1 }
 0x100   :  { %v183_v35 = vadd.f32 %v182_v33, %v97_v27  ;;  %v254_v36 = vadd.f32 %v253_v34, %v105_v28  ;;  %v258_v37 = vmax.f32 %v252_v31, 0.0  ;;  %v256_v40 = vmax.f32 %v181_v32, 0.0 }
 0x102   :  { %v257_v38 = vmax.f32 %v183_v35, 0.0  ;;  %v259_v39 = vmax.f32 %v254_v36, 0.0 }
 0x104   :  { %395 = vmatprep.mubr.f32.mxu0 %v257_v38  ;;  %465 = vmatprep.mubr.f32.mxu1 %v259_v39 }
 0x105   :  { %396 = vmatmul.mubr.f32.vlgmr.msra.gmra.mxu0 %v256_v40  ;;  %466 = vmatmul.mubr.f32.vlgmr.msra.gmra.mxu1 %v258_v37 }
 0x1c5   :  { %v514_v41 = vpop.f32.mrf.mxu0  ;;  %v549_v42 = vpop.f32.mrf.mxu1 }
 0x1c7   :  { %v515_v44 = vpop.f32.mrf.mxu0  ;;  %v550_v45 = vpop.f32.mrf.mxu1 }
 0x1c8   :  { %v516_v46 = vadd.f32 %v515_v44, %v514_v41  ;;  %v551_v48 = vadd.f32 %v550_v45, %v549_v42 }
 0x1ca   :  { %v398_v47 = vadd.f32 %v516_v46, %v481_v43 }
 0x1cc   :  { %v468_v49 = vadd.f32 %v551_v48, %v398_v47 }
 0x1ce   :  { %471 = vst [vmem:[%s709_s5] sm:$0xff] %v468_v49 }
 0x1cf   :  { %476 = vsyncpa [#allocation3], 1 }
 0x1d0   :  { %477 = vsyncpa [#allocation5], 1 }
 0x1d1   :  { %478 = vsyncpa [#allocation8], 1 }

</bundles_post_ra>
